<compile_context>
chip_gen: v7x
topology: tpu7x:2x2x1
jax: 0.10.0
libtpu: 0.0.40
codegen_flags: <defaults>
</compile_context>

<pallas_src>
import numpy as np
import jax
import jax.numpy as jnp
from jax.experimental import pallas as pl
from jax.experimental.pallas import tpu as pltpu


# ----------------------------- Pallas kernel ------------------------------ #
def cbam_kernel(x_ref, w1t_ref, w2t_ref, m_hbm_ref, o_ref, m_vmem, m_sem):
    # x_ref   : (B, C, HW)    lane-dense feature map (VMEM, auto-DMA'd)
    # w1t_ref : (C, Ch)       fc1 weight, pre-transposed on host (VMEM)
    # w2t_ref : (Ch, C)       fc2 weight, pre-transposed on host (VMEM)
    # m_hbm_ref: (2*HW, HW)   bf16 zero-padded 7x7 conv operator, raw HBM ref
    # m_vmem  : (2*HW, HW)    bf16 VMEM scratch for the operator
    # m_sem   : DMA semaphore

    # Kick off the big operator DMA first so it overlaps channel attention.
    m_copy = pltpu.make_async_copy(m_hbm_ref, m_vmem, m_sem)
    m_copy.start()

    x = x_ref[...].astype(jnp.float32)                # (B, C, HW)
    B = x.shape[0]

    # ---------------- channel attention ----------------
    avg = jnp.mean(x, axis=2)                         # (B, C)  lane reduction
    mx = jnp.max(x, axis=2)                           # (B, C)
    pooled = jnp.concatenate([avg, mx], axis=0)       # (2B, C)
    h = jnp.maximum(
        jnp.dot(pooled, w1t_ref[...], preferred_element_type=jnp.float32), 0.0)  # (2B, Ch)
    z = jnp.dot(h, w2t_ref[...], preferred_element_type=jnp.float32)             # (2B, C)
    ca = jax.nn.sigmoid(z[:B] + z[B:])                # (B, C)
    x1 = x * ca[:, :, None]                           # (B, C, HW)

    # ---------------- spatial attention ----------------
    mean_c = jnp.mean(x1, axis=1)                     # (B, HW)  sublane reduction
    max_c = jnp.max(x1, axis=1)                       # (B, HW)
    s = jnp.concatenate([mean_c, max_c], axis=1)      # (B, 2*HW)

    m_copy.wait()                                     # operator now resident
    m = m_vmem[...].astype(jnp.float32)               # bf16 -> f32 (VMEM only)
    conv = jnp.dot(s, m, preferred_element_type=jnp.float32)                     # (B, HW)
    sa = jax.nn.sigmoid(conv)                         # (B, HW)

    o_ref[...] = (x1 * sa[:, None, :]).astype(o_ref.dtype)   # lane-dense store


# ------------------------------ host wrapper ------------------------------ #
def make_conv_matrix(ws, H, W):
    """Dense (2*H*W, H*W) operator of the zero-padded KxK conv on the
    flattened, column-stacked [mean | max] maps.  Each entry is exactly one
    conv tap (or zero), so bf16-quantizing the taps == bf16-quantizing M."""
    ws = np.asarray(ws, dtype=np.float32)             # (2, K, K)
    K = ws.shape[1]
    P = K // 2
    HW = H * W
    M = np.zeros((2 * HW, HW), np.float32)
    for c in range(2):
        for dy in range(K):
            for dx in range(K):
                w = ws[c, dy, dx]
                for i in range(H):
                    si = i + dy - P
                    if not (0 <= si < H):
                        continue
                    for j in range(W):
                        sj = j + dx - P
                        if not (0 <= sj < W):
                            continue
                        M[c * HW + si * W + sj, i * W + j] += w
    return jnp.asarray(M)


def cbam_pallas(x, w1, w2, conv_mat_bf16):
    B, C, H, W = x.shape
    HW = H * W
    Ch = w1.shape[0]
    x_flat = x.reshape(B, C, HW)                      # lane-dense view (free reshape)
    w1t = w1.T                                        # (C, Ch)
    w2t = w2.T                                        # (Ch, C)

    out_flat = pl.pallas_call(
        cbam_kernel,
        out_shape=jax.ShapeDtypeStruct((B, C, HW), x.dtype),
        grid=(1,),                                    # single step: whole problem in VMEM
        in_specs=[
            pl.BlockSpec((B, C, HW), lambda i: (0, 0, 0)),
            pl.BlockSpec((C, Ch), lambda i: (0, 0)),
            pl.BlockSpec((Ch, C), lambda i: (0, 0)),
            pl.BlockSpec(memory_space=pl.ANY),        # raw HBM ref, manual DMA
        ],
        out_specs=pl.BlockSpec((B, C, HW), lambda i: (0, 0, 0)),
        scratch_shapes=[
            pltpu.VMEM((2 * HW, HW), jnp.bfloat16),   # operator landing buffer
            pltpu.SemaphoreType.DMA(()),
        ],
        compiler_params=pltpu.CompilerParams(
            dimension_semantics=("arbitrary",)),
    )(x_flat, w1t, w2t, conv_mat_bf16)
    return out_flat.reshape(B, C, H, W)


# --------------------------- pure-JAX reference ---------------------------- #
def cbam_ref(x, w1, w2, ws):
    B, C, H, W = x.shape
    K = ws.shape[1]
    P = K // 2
    avg = x.mean(axis=(2, 3))                         # (B, C)
    mx = x.max(axis=(2, 3))

    def mlp(v):
        return jnp.maximum(v @ w1.T, 0.0) @ w2.T

    ca = jax.nn.sigmoid(mlp(avg) + mlp(mx))           # (B, C)
    x1 = x * ca[:, :, None, None]
    mean_c = x1.mean(axis=1)                          # (B, H, W)
    max_c = x1.max(axis=1)
    stacked = jnp.stack([mean_c, max_c], axis=1)      # (B, 2, H, W)
    padded = jnp.pad(stacked, ((0, 0), (0, 0), (P, P), (P, P)))
    conv = jnp.zeros((B, H, W), jnp.float32)
    for c in range(2):
        for dy in range(K):
            for dx in range(K):
                conv = conv + ws[c, dy, dx] * padded[:, c, dy:dy + H, dx:dx + W]
    sa = jax.nn.sigmoid(conv)[:, None]
    return x1 * sa


# ---------------------------------- main ----------------------------------- #
if __name__ == "__main__":
    B, C, H, W = 2, 16, 16, 16
    ratio, K = 8, 7
    Ch = C // ratio

    key = jax.random.PRNGKey(0)
    kx, k1, k2, k3 = jax.random.split(key, 4)
    x = jax.random.normal(kx, (B, C, H, W), jnp.float32)
    # ChannelAttention: fc1 = Conv2d(C, C//ratio, 1, bias=False) -> weight (Ch, C)
    #                   fc2 = Conv2d(C//ratio, C, 1, bias=False) -> weight (C, Ch)
    w1 = jax.random.normal(k1, (Ch, C), jnp.float32) * 0.2
    w2 = jax.random.normal(k2, (C, Ch), jnp.float32) * 0.2
    # SpatialAttention: conv1 = Conv2d(2, 1, 7, padding=3, bias=False)
    # -> weight (1, 2, 7, 7), squeeze the single output channel.
    ws = jax.random.normal(k3, (2, K, K), jnp.float32) * 0.1

    # bf16-quantize the conv taps once; kernel stores the dense operator in
    # bf16 (halves the dominant HBM transfer), reference uses the same taps.
    ws_q = ws.astype(jnp.bfloat16).astype(jnp.float32)
    conv_mat = make_conv_matrix(ws_q, H, W)           # (2*H*W, H*W) f32
    conv_mat_bf16 = conv_mat.astype(jnp.bfloat16)     # exact cast (taps already bf16)

    out = cbam_pallas(x, w1, w2, conv_mat_bf16)
    out = jax.block_until_ready(out)

    ref = jax.block_until_ready(cbam_ref(x, w1, w2, ws_q))
    np.testing.assert_allclose(np.asarray(out), np.asarray(ref),
                               rtol=1e-4, atol=1e-4)

    print("KERNEL_OK")
</pallas_src>

<mosaic_0001>
module attributes {stable_mosaic.version = 11 : i64} {
  func.func @cbam_kernel(%arg0: i32, %arg1: memref<2x16x256xf32, #tpu.memory_space<vmem>>, %arg2: memref<16x2xf32, #tpu.memory_space<vmem>>, %arg3: memref<2x16xf32, #tpu.memory_space<vmem>>, %arg4: memref<512x256xbf16, #tpu.memory_space<any>>, %arg5: memref<2x16x256xf32, #tpu.memory_space<vmem>>, %arg6: memref<512x256xbf16, #tpu.memory_space<vmem>>, %arg7: memref<!tpu.dma_semaphore, #tpu.memory_space<semaphore_mem>>) attributes {dimension_semantics = [#tpu.dimension_semantics<arbitrary>], iteration_bounds = array<i64: 1>, scalar_prefetch = 0 : i64, scratch_operands = 2 : i64, tpu.core_type = #tpu.core_type<tc>, window_params = [{pipeline_mode = #tpu.pipeline_mode<synchronous>, transform_indices = @transform_0, window_bounds = array<i64: 2, 16, 256>}, {pipeline_mode = #tpu.pipeline_mode<synchronous>, transform_indices = @transform_1, window_bounds = array<i64: 16, 2>}, {pipeline_mode = #tpu.pipeline_mode<synchronous>, transform_indices = @transform_2, window_bounds = array<i64: 2, 16>}, {}, {pipeline_mode = #tpu.pipeline_mode<synchronous>, transform_indices = @transform_4, window_bounds = array<i64: 2, 16, 256>}]} {
    tpu.enqueue_dma source(%arg4 : memref<512x256xbf16, #tpu.memory_space<any>>) target(%arg6 : memref<512x256xbf16, #tpu.memory_space<vmem>>) target_semaphore(%arg7 : memref<!tpu.dma_semaphore, #tpu.memory_space<semaphore_mem>>)
    %c0 = arith.constant 0 : index
    %c0_0 = arith.constant 0 : index
    %c0_1 = arith.constant 0 : index
    %0 = vector.load %arg1[%c0, %c0_0, %c0_1] : memref<2x16x256xf32, #tpu.memory_space<vmem>>, vector<2x16x256xf32>
    %cst = arith.constant dense<0.000000e+00> : vector<2x16xf32>
    %1 = vector.multi_reduction <add>, %0, %cst [2] : vector<2x16x256xf32> to vector<2x16xf32>
    %cst_2 = arith.constant 2.560000e+02 : f32
    %2 = vector.broadcast %cst_2 : f32 to vector<2x16xf32>
    %3 = arith.divf %1, %2 : vector<2x16xf32>
    %cst_3 = arith.constant dense<0xFF800000> : vector<2x16xf32>
    %4 = vector.multi_reduction <maximumf>, %0, %cst_3 [2] : vector<2x16x256xf32> to vector<2x16xf32>
    %5 = tpu.concatenate %3, %4 in 0 : vector<2x16xf32>, vector<2x16xf32> -> vector<4x16xf32>
    %c0_4 = arith.constant 0 : index
    %c0_5 = arith.constant 0 : index
    %6 = vector.load %arg2[%c0_4, %c0_5] : memref<16x2xf32, #tpu.memory_space<vmem>>, vector<16x2xf32>
    %cst_6 = arith.constant dense<0.000000e+00> : vector<4x2xf32>
    %7 = tpu.matmul %5, %6, %cst_6 {dimension_numbers = #tpu.dot_dimension_numbers<[1], [0], [0], [1], [0, 0, 1, 1], [], []>} : vector<4x16xf32>, vector<16x2xf32>, vector<4x2xf32> -> vector<4x2xf32>
    %cst_7 = arith.constant 0.000000e+00 : f32
    %8 = vector.broadcast %cst_7 : f32 to vector<4x2xf32>
    %9 = arith.maximumf %7, %8 : vector<4x2xf32>
    %c0_8 = arith.constant 0 : index
    %c0_9 = arith.constant 0 : index
    %10 = vector.load %arg3[%c0_8, %c0_9] : memref<2x16xf32, #tpu.memory_space<vmem>>, vector<2x16xf32>
    %cst_10 = arith.constant dense<0.000000e+00> : vector<4x16xf32>
    %11 = tpu.matmul %9, %10, %cst_10 {dimension_numbers = #tpu.dot_dimension_numbers<[1], [0], [0], [1], [0, 0, 1, 1], [], []>} : vector<4x2xf32>, vector<2x16xf32>, vector<4x16xf32> -> vector<4x16xf32>
    %12 = vector.extract_strided_slice %11 {offsets = [0, 0], sizes = [2, 16], strides = [1, 1]} : vector<4x16xf32> to vector<2x16xf32>
    %13 = vector.extract_strided_slice %11 {offsets = [2, 0], sizes = [2, 16], strides = [1, 1]} : vector<4x16xf32> to vector<2x16xf32>
    %14 = arith.addf %12, %13 : vector<2x16xf32>
    %15 = arith.negf %14 : vector<2x16xf32>
    %16 = math.exp %15 : vector<2x16xf32>
    %cst_11 = arith.constant 1.000000e+00 : f32
    %17 = vector.broadcast %cst_11 : f32 to vector<2x16xf32>
    %18 = arith.addf %17, %16 : vector<2x16xf32>
    %19 = arith.divf %17, %18 : vector<2x16xf32>
    %20 = vector.shape_cast %19 : vector<2x16xf32> to vector<2x16x1xf32>
    %21 = vector.broadcast %20 : vector<2x16x1xf32> to vector<2x16x256xf32>
    %22 = arith.mulf %0, %21 : vector<2x16x256xf32>
    %cst_12 = arith.constant dense<0.000000e+00> : vector<2x256xf32>
    %23 = vector.multi_reduction <add>, %22, %cst_12 [1] : vector<2x16x256xf32> to vector<2x256xf32>
    %cst_13 = arith.constant 1.600000e+01 : f32
    %24 = vector.broadcast %cst_13 : f32 to vector<2x256xf32>
    %25 = arith.divf %23, %24 : vector<2x256xf32>
    %cst_14 = arith.constant dense<0xFF800000> : vector<2x256xf32>
    %26 = vector.multi_reduction <maximumf>, %22, %cst_14 [1] : vector<2x16x256xf32> to vector<2x256xf32>
    %27 = tpu.concatenate %25, %26 in 1 : vector<2x256xf32>, vector<2x256xf32> -> vector<2x512xf32>
    tpu.wait_dma2 semaphore(%arg7 : memref<!tpu.dma_semaphore, #tpu.memory_space<semaphore_mem>>) src(%arg4 : memref<512x256xbf16, #tpu.memory_space<any>>) dst(%arg6 : memref<512x256xbf16, #tpu.memory_space<vmem>>)
    %c0_15 = arith.constant 0 : index
    %c0_16 = arith.constant 0 : index
    %28 = vector.load %arg6[%c0_15, %c0_16] : memref<512x256xbf16, #tpu.memory_space<vmem>>, vector<512x256xbf16>
    %29 = arith.extf %28 : vector<512x256xbf16> to vector<512x256xf32>
    %cst_17 = arith.constant dense<0.000000e+00> : vector<2x256xf32>
    %30 = tpu.matmul %27, %29, %cst_17 {dimension_numbers = #tpu.dot_dimension_numbers<[1], [0], [0], [1], [0, 0, 1, 1], [], []>} : vector<2x512xf32>, vector<512x256xf32>, vector<2x256xf32> -> vector<2x256xf32>
    %31 = arith.negf %30 : vector<2x256xf32>
    %32 = math.exp %31 : vector<2x256xf32>
    %cst_18 = arith.constant 1.000000e+00 : f32
    %33 = vector.broadcast %cst_18 : f32 to vector<2x256xf32>
    %34 = arith.addf %33, %32 : vector<2x256xf32>
    %35 = arith.divf %33, %34 : vector<2x256xf32>
    %36 = vector.shape_cast %35 : vector<2x256xf32> to vector<2x1x256xf32>
    %37 = vector.broadcast %36 : vector<2x1x256xf32> to vector<2x16x256xf32>
    %38 = arith.mulf %22, %37 : vector<2x16x256xf32>
    %c0_19 = arith.constant 0 : index
    %c0_20 = arith.constant 0 : index
    %c0_21 = arith.constant 0 : index
    %39 = vector.load %arg5[%c0_19, %c0_20, %c0_21] : memref<2x16x256xf32, #tpu.memory_space<vmem>>, vector<2x16x256xf32>
    tpu.vector_store %arg5[%c0_19, %c0_20, %c0_21], %38 {strides = array<i32>} : memref<2x16x256xf32, #tpu.memory_space<vmem>>, vector<2x16x256xf32>,
    return
  }
  func.func @transform_0(%arg0: i32) -> (i32, i32, i32) {
    %c0_i32 = arith.constant 0 : i32
    %c0_i32_0 = arith.constant 0 : i32
    %c0_i32_1 = arith.constant 0 : i32
    %c0_i32_2 = arith.constant 0 : i32
    return %c0_i32, %c0_i32_0, %c0_i32_1 : i32, i32, i32
  }
  func.func @transform_1(%arg0: i32) -> (i32, i32) {
    %c0_i32 = arith.constant 0 : i32
    %c0_i32_0 = arith.constant 0 : i32
    %c0_i32_1 = arith.constant 0 : i32
    return %c0_i32, %c0_i32_0 : i32, i32
  }
  func.func @transform_2(%arg0: i32) -> (i32, i32) {
    %c0_i32 = arith.constant 0 : i32
    %c0_i32_0 = arith.constant 0 : i32
    %c0_i32_1 = arith.constant 0 : i32
    return %c0_i32, %c0_i32_0 : i32, i32
  }
  func.func @transform_4(%arg0: i32) -> (i32, i32, i32) {
    %c0_i32 = arith.constant 0 : i32
    %c0_i32_0 = arith.constant 0 : i32
    %c0_i32_1 = arith.constant 0 : i32
    %c0_i32_2 = arith.constant 0 : i32
    return %c0_i32, %c0_i32_0, %c0_i32_1 : i32, i32, i32
  }
}

</mosaic_0001>

<bundles_post_ra>
// kernel: tpu_custom_call.1
= control target key start
LH: loop header
LB: loop body
LE: loop exit
PB: predicated region body
PF: predicated region fallthrough
CT: control target
= control target key end

     0   :  { %9 = vsyncpa [#allocation5], 0  ;;  %s1292_s0 = inlined_call_operand.hbm [shape: f32[2,16,256], index: 0, kind: input, shape index: {}]   ;;  %s1293_s1 = inlined_call_operand.vmem [shape: f32[16,2], index: 1, kind: input, shape index: {}]   ;;  %s1294_s2 = inlined_call_operand.vmem [shape: f32[2,16], index: 2, kind: input, shape index: {}]   ;;  %s1295_s3 = inlined_call_operand.hbm [shape: bf16[512,256], index: 3, kind: input, shape index: {}]   ;;  %s1296_s4 = inlined_call_operand.hbm [shape: f32[2,16,256], index: 4, kind: output, shape index: {}]  }
   0x1   :  { %10 = vsyncpa [#allocation6], 0  ;;  %s1100_s15 = smov [#allocation4]   ;;  %s1050_s19 = scalar_lea.hbm %s1292_s0, 1024 }
   0x2   :  { %s16_s16 = sshll.u32 %s1100_s15, 4  ;;  %p1051_p0 = scmp.ne.s32.totalorder %s1292_s0, %s1050_s19  ;;  %s17_s16 = int_to_ptr.vmem [resolvable:$true] %s16_s16 }
   0x3   :  { %p1054_p1 = scmp.lt.u32.totalorder %s1050_s19, %s1292_s0 }
   0x5   :  { %p1056_p2 = pnand %p1054_p1, %p1051_p0 }
   0x7   :  { %1059 = shalt.err (!%p1056_p2)
}
   0x8   :  { %s1060_s24 = scalar_lea.vmem %s17_s16, 1024  ;;  %p1065_p4 = scmp.lt.s32.totalorder %s17_s16, %s17_s16 }
   0x9   :  { %p1061_p3 = scmp.ne.s32.totalorder %s17_s16, %s1060_s24  ;;  %p1066_p5 = scmp.lt.s32.totalorder %s1060_s24, %s1060_s24 }
   0xb   :  { %p1067_p6 = por %p1066_p5, %p1065_p4 }
   0xd   :  { %p1068_p7 = pnand %p1067_p6, %p1061_p3 }
   0xf   :  { %1071 = shalt.err (!%p1068_p7)
}
  0x10   :  { %s1101_s25 = smov 256   ;;  %s1102_s26 = smov 16  }
  0x11   :  { %22 = dma.hbm_to_vmem [thread:$0]  %s1292_s0, 1024, %s17_s16, [#allocation5], %s1101_s25, %s1101_s25, %s1102_s26  }
  0x12   :  { %1094 = dma.done.wait [#allocation5], 1024  }
  0x13   :  { %1095 = vsyncadd [#allocation5], 4294966272  ;;  %s34_s29 = sld [smem:[#allocation0]]   ;;  %46 = sst [smem:[#allocation9]] %s1101_s25  ;;  %v1110_v19 = vmov 0.0|0.0   ;;  %vm1111_vm0 = vmmov 0   ;;  %v106_v21 = vlaneseq }
  0x14   :  { %48 = sst [smem:[#allocation9 + $0x1]] %s1101_s25  ;;  %s1103_s30 = smov 2   ;;  %890 = vmatprep.subr.bf16.mxu0 %v1110_v19  ;;  %v1112_v20 = vmov 0.0   ;;  %vm117_vm1 = vcmask 130112   ;;  %vm128_vm2 = vcmask 1041409   ;;  %vm153_vm3 = vcmask 1043459  }
  0x15   :  { %50 = sst [smem:[#allocation9 + $0x2]] %s1103_s30  ;;  %s1104_s5 = smov 64   ;;  %882 = vmatprep.mubr.msk.f32.mxu0 %vm1111_vm0, %v1112_v20  ;;  %885 = vmatprep.subr.mxu1 %v1112_v20  ;;  %v107_v22 = vand.u32 127, %v106_v21  ;;  %v1198_v26 = vshrl.u32 %v106_v21, 7  ;;  %vm156_vm4 = vcmask 1041408   ;;  %vm160_vm5 = vcmask 130048  }
  0x16   :  { %52 = sst [smem:[#allocation9 + $0x3]] %s1104_s5  ;;  %s1105_s6 = smov 128   ;;  %887 = vmatprep.mubr.msk.f32.mxu1 %vm1111_vm0, %v1112_v20  ;;  %vm236_vm6 = vcmask 15360  }
  0x17   :  { %54 = sst [smem:[#allocation9 + $0x4]] %s1105_s6  ;;  %s1106_s7 = smov [#allocation2]   ;;  %v112_v25 = vadd.s32 4294967288, %v107_v22  ;;  %v110_v32 = vsub.s32 %v107_v22, %v1198_v26 }
  0x18   :  { %s42_s8 = sshll.u32 %s1106_s7, 4  ;;  %56 = sst [smem:[#allocation9 + $0x5]] %s1103_s30  ;;  %s43_s8 = int_to_ptr.vmem [resolvable:$true] %s42_s8 }
  0x19   :  { %s864_s9 = sshll.u32 %s34_s29, 26  ;;  %58 = sst [smem:[#allocation9 + $0x6]] %s1105_s6  ;;  %v115_v29 = vsub.s32 %v112_v25, %v1198_v26 }
  0x1a   :  { %s865_s0 = sadd.s32 134217728, %s864_s9  ;;  %60 = sst [smem:[#allocation9 + $0x7]] %s1104_s5 }
  0x1b   :  { %s1107_s10 = smov 4   ;;  %s1108_s11 = smov [#allocation3]  }
  0x1c   :  { %62 = sst [smem:[#allocation9 + $0x8]] %s1107_s10  ;;  %s1109_s12 = smov [#allocation8]  }
  0x1d   :  { %64 = dma.general %s1295_s3, 8192, %s43_s8, %s1108_s11, %s1109_s12, [#allocation9], %s865_s0, 0  }
  0x1e   :  { %v1160_v0 = vld [vmem:[#allocation4 + $0x20] sm:$0xff]  ;;  %v1162_v1 = vld [vmem:[#allocation4 + $0x28] sm:$0xff]  ;;  %v1170_v5 = vld [vmem:[#allocation4 + $0x30] sm:$0xff] }
  0x1f   :  { %v1164_v2 = vld [vmem:[#allocation4] sm:$0xff]  ;;  %v79_v3 = vadd.f32 %v1162_v1, %v1160_v0  ;;  %v1168_v4 = vld [vmem:[#allocation4 + $0x8] sm:$0xff]  ;;  %v1172_v6 = vld [vmem:[#allocation4 + $0x38] sm:$0xff]  ;;  %v96_v15 = vmax.f32 %v1160_v0, %v1162_v1 }
  0x20   :  { %v73_v7 = vadd.f32 %v1168_v4, %v1164_v2  ;;  %v1176_v8 = vld [vmem:[#allocation4 + $0x10] sm:$0xff]  ;;  %v1178_v9 = vld [vmem:[#allocation4 + $0x18] sm:$0xff]  ;;  %v82_v10 = vadd.f32 %v1172_v6, %v1170_v5  ;;  %v90_v13 = vmax.f32 %v1164_v2, %v1168_v4  ;;  %v99_v14 = vmax.f32 %v1170_v5, %v1172_v6  ;;  %v158_v16 = vld [vmem:[%s1293_s1] sm:$0xff] }
  0x21   :  { %80 = vadd.xlane.f32.xlu1 %v79_v3  ;;  %v76_v11 = vadd.f32 %v1178_v9, %v1176_v8  ;;  %v93_v12 = vmax.f32 %v1176_v8, %v1178_v9  ;;  %v159_v17 = vld [vmem:[%s1293_s1 + $0x8] sm:$0xff]  ;;  %v235_v54 = vld [vmem:[%s1294_s2] sm:$0x3] }
  0x22   :  { %74 = vadd.xlane.f32.xlu0 %v73_v7  ;;  %v891_v18 = vpack.c.bf16 %v159_v17, %v158_v16  ;;  %886 = vmatpush3.msk.msra.mxu1 %vm156_vm4, %v235_v54  ;;  %v1207_v7 = vsub.s32 0, %v1198_v26 }
  0x24   :  { %892 = vmatpush3.bf16.msra.mxu0 %v891_v18 }
  0x25   :  { %83 = vadd.xlane.f32.xlu1 %v82_v10 }
  0x26   :  { %77 = vadd.xlane.f32.xlu0 %v76_v11 }
  0x29   :  { %94 = vmax.xlane.f32.xlu1 %v93_v12  ;;  %v1211_v12 = vsub.s32 1, %v1198_v26 }
  0x2a   :  { %91 = vmax.xlane.f32.xlu0 %v90_v13 }
  0x2d   :  { %100 = vmax.xlane.f32.xlu1 %v99_v14 }
  0x2e   :  { %97 = vmax.xlane.f32.xlu0 %v96_v15 }
  0xae   :  { %v81_v23 = vpop.xlane.xlu1 %80 }
  0xaf   :  { %v75_v24 = vpop.xlane.xlu0 %74  ;;  %v88_v33 = vmul.f32 0.00390625, %v81_v23 }
  0xb0   :  { %v86_v34 = vmul.f32 0.00390625, %v75_v24 }
  0xb1   :  { %v122_v39 = vrot.slane %v88_v33, %v110_v32 }
  0xb2   :  { %v84_v27 = vpop.xlane.xlu1 %83  ;;  %v111_v40 = vrot.slane %v86_v34, %v110_v32 }
  0xb3   :  { %v78_v28 = vpop.xlane.xlu0 %77  ;;  %v89_v30 = vmul.f32 0.00390625, %v84_v27 }
  0xb4   :  { %v87_v31 = vmul.f32 0.00390625, %v78_v28 }
  0xb5   :  { %v126_v37 = vrot.slane %v89_v30, %v115_v29 }
  0xb6   :  { %v95_v35 = vpop.xlane.xlu1 %94  ;;  %v116_v38 = vrot.slane %v87_v31, %v115_v29 }
  0xb7   :  { %v92_v36 = vpop.xlane.xlu0 %91  ;;  %v142_v41 = vrot.slane %v95_v35, %v115_v29  ;;  %v127_v46 = vsel %vm117_vm1, %v126_v37, %v122_v39 }
  0xb8   :  { %v138_v42 = vrot.slane %v92_v36, %v110_v32  ;;  %v118_v47 = vsel %vm117_vm1, %v116_v38, %v111_v40 }
  0xb9   :  { %v129_v51 = vsel %vm128_vm2, %v127_v46, %v118_v47 }
  0xba   :  { %v101_v43 = vpop.xlane.xlu1 %100  ;;  %v143_v49 = vsel %vm117_vm1, %v142_v41, %v138_v42 }
  0xbb   :  { %v151_v44 = vrot.slane %v101_v43, %v115_v29  ;;  %v98_v45 = vpop.xlane.xlu0 %97 }
  0xbc   :  { %v147_v48 = vrot.slane %v98_v45, %v110_v32 }
  0xbe   :  { %v152_v50 = vsel %vm117_vm1, %v151_v44, %v147_v48 }
  0xbf   :  { %v154_v52 = vsel %vm153_vm3, %v152_v50, %v143_v49 }
  0xc0   :  { %v157_v53 = vsel %vm156_vm4, %v129_v51, %v154_v52 }
  0xc1   :  { %883 = vmatmul.mubr.msk.f32.vlgmr.msra.gmra.mrb[0].mxu0 %vm160_vm5, %v157_v53 }
 0x194   :  { %v230_v55 = vpop.f32.mrb[0].mxu0 }
 0x195   :  { %v234_v56 = vmax.f32 %v230_v55, 0.0  ;;  %v884_v57 = vpop.f32.mrb[1].mxu0 }
 0x197   :  { %888 = vmatmul.mubr.msk.f32.vlgmr.msra.gmra.mrb[0].mxu1 %vm236_vm6, %v234_v56 }
 0x26a   :  { %v309_v58 = vpop.f32.mrb[0].mxu1 }
 0x26b   :  { %v314_v59 = vrot.slane %v309_v58, 2  ;;  %v889_v60 = vpop.f32.mrb[1].mxu1 }
 0x26d   :  { %v316_v61 = vadd.f32 %v314_v59, %v309_v58 }
 0x26f   :  { %v869_v62 = vmul.f32 -1.442695, %v316_v61 }
 0x271   :  { %1038 = vpow2.f32 %v869_v62 }
 0x27b   :  { %v1039_v63 = vpop.eup %1038 }
 0x27c   :  { %v320_v3 = vadd.f32 1.0, %v1039_v63 }
 0x27e   :  { %1040 = vrcp.f32 %v320_v3 }
 0x288   :  { %v1041_v10 = vpop.eup %1040 }
 0x289   :  { %v326_v11 = vrot.slane %v1041_v10, %v1207_v7  ;;  %v337_v13 = vrot.slane %v1041_v10, %v1211_v12 }
 0x28b   :  { %332 = vbcast.lane.b32.xlu1 %v326_v11, 264  ;;  %328 = vbcast.lane.b32.xlu0 %v326_v11, 256 }
 0x28f   :  { %339 = vbcast.lane.b32.xlu1 %v337_v13, 256 }
 0x293   :  { %343 = vbcast.lane.b32.xlu1 %v337_v13, 264 }
 0x2fd   :  { %v333_v14 = vpop.permute.xlu1 %332  ;;  %v329_v15 = vpop.permute.xlu0 %328 }
 0x2fe   :  { %v1215_v16 = vmul.f32 %v333_v14, %v1176_v8  ;;  %v1218_v17 = vmul.f32 %v333_v14, %v1178_v9  ;;  %v1221_v18 = vmul.f32 %v329_v15, %v1164_v2  ;;  %v1224_v19 = vmul.f32 %v329_v15, %v1168_v4 }
 0x300   :  { %v353_v20 = vadd.f32 %v1215_v16, %v1221_v18  ;;  %v360_v21 = vadd.f32 %v1218_v17, %v1224_v19  ;;  %v386_v22 = vmax.f32 %v1221_v18, %v1215_v16  ;;  %v393_v8 = vmax.f32 %v1224_v19, %v1218_v17 }
 0x301   :  { %v340_v9 = vpop.permute.xlu1 %339 }
 0x302   :  { %v354_v23 = vrot.slane %v353_v20, 4  ;;  %v361_v24 = vrot.slane %v360_v21, 4  ;;  %v387_v2 = vrot.slane %v386_v22, 4  ;;  %v394_v25 = vrot.slane %v393_v8, 4 }
 0x303   :  { %v1235_v33 = vmul.f32 %v340_v9, %v1160_v0  ;;  %v1238_v34 = vmul.f32 %v340_v9, %v1162_v1 }
 0x304   :  { %v355_v27 = vadd.f32 %v354_v23, %v353_v20  ;;  %v362_v4 = vadd.f32 %v361_v24, %v360_v21  ;;  %v388_v28 = vmax.f32 %v386_v22, %v387_v2  ;;  %v395_v29 = vmax.f32 %v393_v8, %v394_v25 }
 0x305   :  { %v344_v30 = vpop.permute.xlu1 %343 }
 0x306   :  { %v356_v31 = vrot.slane %v355_v27, 2  ;;  %v363_v32 = vrot.slane %v362_v4, 2  ;;  %v1241_v35 = vmul.f32 %v344_v30, %v1170_v5  ;;  %v1244_v36 = vmul.f32 %v344_v30, %v1172_v6 }
 0x307   :  { %v389_v37 = vrot.slane %v388_v28, 2  ;;  %v396_v38 = vrot.slane %v395_v29, 2 }
 0x308   :  { %v367_v39 = vadd.f32 %v1241_v35, %v1235_v33  ;;  %v374_v40 = vadd.f32 %v1244_v36, %v1238_v34  ;;  %v400_v0 = vmax.f32 %v1235_v33, %v1241_v35  ;;  %v407_v1 = vmax.f32 %v1238_v34, %v1244_v36 }
 0x309   :  { %v357_v41 = vadd.f32 %v356_v31, %v355_v27  ;;  %v364_v5 = vadd.f32 %v363_v32, %v362_v4  ;;  %v390_v45 = vmax.f32 %v388_v28, %v389_v37  ;;  %v397_v46 = vmax.f32 %v395_v29, %v396_v38 }
 0x30a   :  { %v368_v42 = vrot.slane %v367_v39, 4  ;;  %v375_v43 = vrot.slane %v374_v40, 4  ;;  %v401_v6 = vrot.slane %v400_v0, 4  ;;  %v408_v44 = vrot.slane %v407_v1, 4 }
 0x30b   :  { %v358_v51 = vrot.slane %v357_v41, 1  ;;  %v365_v52 = vrot.slane %v364_v5, 1  ;;  %v391_v57 = vrot.slane %v390_v45, 1  ;;  %v398_v58 = vrot.slane %v397_v46, 1 }
 0x30c   :  { %v369_v47 = vadd.f32 %v368_v42, %v367_v39  ;;  %v376_v48 = vadd.f32 %v375_v43, %v374_v40  ;;  %v402_v49 = vmax.f32 %v400_v0, %v401_v6  ;;  %v409_v50 = vmax.f32 %v407_v1, %v408_v44 }
 0x30d   :  { %v359_v63 = vadd.f32 %v358_v51, %v357_v41  ;;  %v366_v3 = vadd.f32 %v365_v52, %v364_v5  ;;  %v392_v15 = vmax.f32 %v390_v45, %v391_v57  ;;  %v399_v20 = vmax.f32 %v397_v46, %v398_v58 }
 0x30e   :  { %v370_v53 = vrot.slane %v369_v47, 2  ;;  %v377_v54 = vrot.slane %v376_v48, 2  ;;  %v403_v55 = vrot.slane %v402_v49, 2  ;;  %v410_v56 = vrot.slane %v409_v50, 2 }
 0x30f   :  { %v382_v23 = vmul.f32 0.0625, %v359_v63  ;;  %v383_v24 = vmul.f32 0.0625, %v366_v3 }
 0x310   :  { %v371_v59 = vadd.f32 %v370_v53, %v369_v47  ;;  %v378_v60 = vadd.f32 %v377_v54, %v376_v48  ;;  %v404_v61 = vmax.f32 %v402_v49, %v403_v55  ;;  %v411_v62 = vmax.f32 %v409_v50, %v410_v56 }
 0x312   :  { %v372_v10 = vrot.slane %v371_v59, 1  ;;  %v379_v11 = vrot.slane %v378_v60, 1  ;;  %v405_v13 = vrot.slane %v404_v61, 1  ;;  %v412_v14 = vrot.slane %v411_v62, 1 }
 0x314   :  { %v373_v21 = vadd.f32 %v372_v10, %v371_v59  ;;  %v380_v22 = vadd.f32 %v379_v11, %v378_v60  ;;  %v406_v8 = vmax.f32 %v404_v61, %v405_v13  ;;  %v413_v9 = vmax.f32 %v411_v62, %v412_v14 }
 0x316   :  { %v384_v2 = vmul.f32 0.0625, %v373_v21  ;;  %v385_v25 = vmul.f32 0.0625, %v380_v22  ;;  %v1255_v27 = vsel %vm128_vm2, %v406_v8, %v392_v15  ;;  %v427_v4 = vsel %vm128_vm2, %v413_v9, %v399_v20 }
 0x318   :  { %v1259_v28 = vsel %vm128_vm2, %v384_v2, %v382_v23  ;;  %v419_v29 = vsel %vm128_vm2, %v385_v25, %v383_v24 }
 0x319   :  { %1096 = dma.done.wait [#allocation3], 8192 }
 0x31a   :  { %1097 = vsyncadd [#allocation3], 4294959104  ;;  %690 = vmatprep.mubr.f32.mxu0 %v419_v29  ;;  %761 = vmatprep.mubr.f32.mxu1 %v427_v4  ;;  %v435_v30 = vld [vmem:[#allocation2 + $0x8] sm:$0xff]  ;;  %v434_v32 = vld [vmem:[#allocation2] sm:$0xff]  ;;  %s1114_s2 = smov [#allocation7]  }
 0x31b   :  { %v467_v31 = vld [vmem:[#allocation2 + $0x108] sm:$0xff]  ;;  %894 = vmatprep.subr.bf16.mxu0 %v435_v30  ;;  %v466_v37 = vld [vmem:[#allocation2 + $0x100] sm:$0xff]  ;;  %v437_v38 = vld [vmem:[#allocation2 + $0x18] sm:$0xff]  ;;  %s846_s19 = sshll.u32 %s1114_s2, 4  ;;  %s847_s19 = int_to_ptr.vmem [resolvable:$true] %s846_s19 }
 0x31c   :  { %958 = vmatprep.subr.bf16.mxu1 %v467_v31  ;;  %v469_v39 = vld [vmem:[#allocation2 + $0x118] sm:$0xff]  ;;  %896 = vmatpush1.bf16.msra.mxu0 %v434_v32  ;;  %v436_v40 = vld [vmem:[#allocation2 + $0x10] sm:$0xff]  ;;  %v439_v1 = vld [vmem:[#allocation2 + $0x28] sm:$0xff]  ;;  %s1072_s20 = scalar_lea.vmem %s847_s19, 1024  ;;  %p1077_p9 = scmp.lt.s32.totalorder %s847_s19, %s847_s19 }
 0x31d   :  { %960 = vmatpush1.bf16.msra.mxu1 %v466_v37  ;;  %898 = vmatprep.subr.bf16.mxu0 %v437_v38  ;;  %v468_v0 = vld [vmem:[#allocation2 + $0x110] sm:$0xff]  ;;  %v471_v41 = vld [vmem:[#allocation2 + $0x128] sm:$0xff]  ;;  %v438_v5 = vld [vmem:[#allocation2 + $0x20] sm:$0xff]  ;;  %p1073_p8 = scmp.ne.s32.totalorder %s847_s19, %s1072_s20  ;;  %p1078_p10 = scmp.lt.s32.totalorder %s1072_s20, %s1072_s20 }
 0x31e   :  { %962 = vmatprep.subr.bf16.mxu1 %v469_v39  ;;  %v470_v42 = vld [vmem:[#allocation2 + $0x120] sm:$0xff]  ;;  %v441_v43 = vld [vmem:[#allocation2 + $0x38] sm:$0xff]  ;;  %v440_v44 = vld [vmem:[#allocation2 + $0x30] sm:$0xff] }
 0x31f   :  { %v473_v6 = vld [vmem:[#allocation2 + $0x138] sm:$0xff]  ;;  %v472_v45 = vld [vmem:[#allocation2 + $0x130] sm:$0xff]  ;;  %v443_v46 = vld [vmem:[#allocation2 + $0x48] sm:$0xff]  ;;  %p1079_p11 = por %p1078_p10, %p1077_p9 }
 0x320   :  { %900 = vmatpush1.bf16.msra.mxu0 %v436_v40  ;;  %v475_v47 = vld [vmem:[#allocation2 + $0x148] sm:$0xff]  ;;  %v442_v48 = vld [vmem:[#allocation2 + $0x40] sm:$0xff]  ;;  %v445_v50 = vld [vmem:[#allocation2 + $0x58] sm:$0xff] }
 0x321   :  { %964 = vmatpush1.bf16.msra.mxu1 %v468_v0  ;;  %902 = vmatprep.subr.bf16.mxu0 %v439_v1  ;;  %v474_v49 = vld [vmem:[#allocation2 + $0x140] sm:$0xff]  ;;  %v477_v51 = vld [vmem:[#allocation2 + $0x158] sm:$0xff]  ;;  %v444_v52 = vld [vmem:[#allocation2 + $0x50] sm:$0xff]  ;;  %p1080_p12 = pnand %p1079_p11, %p1073_p8 }
 0x322   :  { %966 = vmatprep.subr.bf16.mxu1 %v471_v41  ;;  %v476_v53 = vld [vmem:[#allocation2 + $0x150] sm:$0xff]  ;;  %v447_v54 = vld [vmem:[#allocation2 + $0x68] sm:$0xff]  ;;  %v446_v56 = vld [vmem:[#allocation2 + $0x60] sm:$0xff] }
 0x323   :  { %v479_v55 = vld [vmem:[#allocation2 + $0x168] sm:$0xff]  ;;  %v478_v57 = vld [vmem:[#allocation2 + $0x160] sm:$0xff]  ;;  %v449_v58 = vld [vmem:[#allocation2 + $0x78] sm:$0xff] }
 0x324   :  { %904 = vmatpush1.bf16.msra.mxu0 %v438_v5  ;;  %v481_v59 = vld [vmem:[#allocation2 + $0x178] sm:$0xff]  ;;  %v448_v60 = vld [vmem:[#allocation2 + $0x70] sm:$0xff]  ;;  %v451_v62 = vld [vmem:[#allocation2 + $0x88] sm:$0xff] }
 0x325   :  { %968 = vmatpush1.bf16.msra.mxu1 %v470_v42  ;;  %906 = vmatprep.subr.bf16.mxu0 %v441_v43  ;;  %v480_v61 = vld [vmem:[#allocation2 + $0x170] sm:$0xff]  ;;  %v483_v63 = vld [vmem:[#allocation2 + $0x188] sm:$0xff]  ;;  %v450_v3 = vld [vmem:[#allocation2 + $0x80] sm:$0xff] }
 0x326   :  { %970 = vmatprep.subr.bf16.mxu1 %v473_v6  ;;  %v482_v10 = vld [vmem:[#allocation2 + $0x180] sm:$0xff]  ;;  %v453_v11 = vld [vmem:[#allocation2 + $0x98] sm:$0xff]  ;;  %v452_v14 = vld [vmem:[#allocation2 + $0x90] sm:$0xff] }
 0x327   :  { %v485_v13 = vld [vmem:[#allocation2 + $0x198] sm:$0xff]  ;;  %v484_v15 = vld [vmem:[#allocation2 + $0x190] sm:$0xff]  ;;  %v455_v20 = vld [vmem:[#allocation2 + $0xa8] sm:$0xff] }
 0x328   :  { %908 = vmatpush1.bf16.msra.mxu0 %v440_v44  ;;  %v487_v21 = vld [vmem:[#allocation2 + $0x1a8] sm:$0xff]  ;;  %v454_v22 = vld [vmem:[#allocation2 + $0xa0] sm:$0xff]  ;;  %v457_v9 = vld [vmem:[#allocation2 + $0xb8] sm:$0xff] }
 0x329   :  { %972 = vmatpush1.bf16.msra.mxu1 %v472_v45  ;;  %910 = vmatprep.subr.bf16.mxu0 %v443_v46  ;;  %v486_v8 = vld [vmem:[#allocation2 + $0x1a0] sm:$0xff]  ;;  %v489_v23 = vld [vmem:[#allocation2 + $0x1b8] sm:$0xff]  ;;  %v456_v24 = vld [vmem:[#allocation2 + $0xb0] sm:$0xff] }
 0x32a   :  { %974 = vmatprep.subr.bf16.mxu1 %v475_v47  ;;  %v488_v2 = vld [vmem:[#allocation2 + $0x1b0] sm:$0xff]  ;;  %v459_v25 = vld [vmem:[#allocation2 + $0xc8] sm:$0xff]  ;;  %v458_v29 = vld [vmem:[#allocation2 + $0xc0] sm:$0xff] }
 0x32b   :  { %v491_v4 = vld [vmem:[#allocation2 + $0x1c8] sm:$0xff]  ;;  %v490_v30 = vld [vmem:[#allocation2 + $0x1c0] sm:$0xff]  ;;  %v461_v31 = vld [vmem:[#allocation2 + $0xd8] sm:$0xff] }
 0x32c   :  { %912 = vmatpush1.bf16.msra.mxu0 %v442_v48  ;;  %v493_v32 = vld [vmem:[#allocation2 + $0x1d8] sm:$0xff]  ;;  %v460_v37 = vld [vmem:[#allocation2 + $0xd0] sm:$0xff]  ;;  %v463_v39 = vld [vmem:[#allocation2 + $0xe8] sm:$0xff] }
 0x32d   :  { %976 = vmatpush1.bf16.msra.mxu1 %v474_v49  ;;  %914 = vmatprep.subr.bf16.mxu0 %v445_v50  ;;  %v492_v38 = vld [vmem:[#allocation2 + $0x1d0] sm:$0xff]  ;;  %v495_v40 = vld [vmem:[#allocation2 + $0x1e8] sm:$0xff]  ;;  %v462_v0 = vld [vmem:[#allocation2 + $0xe0] sm:$0xff] }
 0x32e   :  { %978 = vmatprep.subr.bf16.mxu1 %v477_v51  ;;  %v494_v1 = vld [vmem:[#allocation2 + $0x1e0] sm:$0xff]  ;;  %v465_v41 = vld [vmem:[#allocation2 + $0xf8] sm:$0xff]  ;;  %v464_v42 = vld [vmem:[#allocation2 + $0xf0] sm:$0xff] }
 0x32f   :  { %v497_v5 = vld [vmem:[#allocation2 + $0x1f8] sm:$0xff]  ;;  %v496_v43 = vld [vmem:[#allocation2 + $0x1f0] sm:$0xff] }
 0x330   :  { %916 = vmatpush1.bf16.msra.mxu0 %v444_v52 }
 0x331   :  { %980 = vmatpush1.bf16.msra.mxu1 %v476_v53  ;;  %918 = vmatprep.subr.bf16.mxu0 %v447_v54 }
 0x332   :  { %982 = vmatprep.subr.bf16.mxu1 %v479_v55  ;;  %v1113_v55 = vmov 1966171168  }
 0x334   :  { %920 = vmatpush1.bf16.msra.mxu0 %v446_v56 }
 0x335   :  { %984 = vmatpush1.bf16.msra.mxu1 %v478_v57  ;;  %922 = vmatprep.subr.bf16.mxu0 %v449_v58 }
 0x336   :  { %986 = vmatprep.subr.bf16.mxu1 %v481_v59 }
 0x338   :  { %924 = vmatpush1.bf16.msra.mxu0 %v448_v60 }
 0x339   :  { %988 = vmatpush1.bf16.msra.mxu1 %v480_v61  ;;  %926 = vmatprep.subr.bf16.mxu0 %v451_v62 }
 0x33a   :  { %990 = vmatprep.subr.bf16.mxu1 %v483_v63 }
 0x33c   :  { %928 = vmatpush1.bf16.msra.mxu0 %v450_v3 }
 0x33d   :  { %992 = vmatpush1.bf16.msra.mxu1 %v482_v10  ;;  %930 = vmatprep.subr.bf16.mxu0 %v453_v11 }
 0x33e   :  { %994 = vmatprep.subr.bf16.mxu1 %v485_v13 }
 0x340   :  { %932 = vmatpush1.bf16.msra.mxu0 %v452_v14 }
 0x341   :  { %996 = vmatpush1.bf16.msra.mxu1 %v484_v15  ;;  %934 = vmatprep.subr.bf16.mxu0 %v455_v20 }
 0x342   :  { %998 = vmatprep.subr.bf16.mxu1 %v487_v21 }
 0x344   :  { %936 = vmatpush1.bf16.msra.mxu0 %v454_v22 }
 0x345   :  { %1000 = vmatpush1.bf16.msra.mxu1 %v486_v8  ;;  %938 = vmatprep.subr.bf16.mxu0 %v457_v9 }
 0x346   :  { %1002 = vmatprep.subr.bf16.mxu1 %v489_v23 }
 0x348   :  { %940 = vmatpush1.bf16.msra.mxu0 %v456_v24 }
 0x349   :  { %1004 = vmatpush1.bf16.msra.mxu1 %v488_v2  ;;  %942 = vmatprep.subr.bf16.mxu0 %v459_v25 }
 0x34a   :  { %1006 = vmatprep.subr.bf16.mxu1 %v491_v4 }
 0x34c   :  { %944 = vmatpush1.bf16.msra.mxu0 %v458_v29 }
 0x34d   :  { %1008 = vmatpush1.bf16.msra.mxu1 %v490_v30  ;;  %946 = vmatprep.subr.bf16.mxu0 %v461_v31 }
 0x34e   :  { %1010 = vmatprep.subr.bf16.mxu1 %v493_v32 }
 0x350   :  { %948 = vmatpush1.bf16.msra.mxu0 %v460_v37 }
 0x351   :  { %1012 = vmatpush1.bf16.msra.mxu1 %v492_v38  ;;  %950 = vmatprep.subr.bf16.mxu0 %v463_v39 }
 0x352   :  { %1014 = vmatprep.subr.bf16.mxu1 %v495_v40 }
 0x354   :  { %952 = vmatpush1.bf16.msra.mxu0 %v462_v0 }
 0x355   :  { %1016 = vmatpush1.bf16.msra.mxu1 %v494_v1  ;;  %954 = vmatprep.subr.bf16.mxu0 %v465_v41 }
 0x356   :  { %1018 = vmatprep.subr.bf16.mxu1 %v497_v5 }
 0x358   :  { %956 = vmatpush1.bf16.msra.mxu0 %v464_v42 }
 0x359   :  { %1020 = vmatpush1.bf16.msra.mxu1 %v496_v43 }
 0x35b   :  { %691 = vmatmul.mubr.f32.vlgmr.msra.gmra.mrb[2].mxu0 %v1259_v28  ;;  %v784_v28 = vunpack.c.l.s4 %v1113_v55 }
 0x35c   :  { %762 = vmatmul.mubr.f32.vlgmr.msra.gmra.mrb[2].mxu1 %v1255_v27 }
 0x35d   :  { %v785_v56 = vunpack.c.0.s8 %v784_v28 }
 0x35f   :  { %v788_v57 = vsub.s32 %v785_v56, %v1198_v26 }
 0x42e   :  { %v692_v6 = vpop.f32.mrb[2].mxu0 }
 0x42f   :  { %v763_v44 = vpop.f32.mrb[2].mxu1  ;;  %v694_v46 = vpop.f32.mrb[3].mxu0 }
 0x430   :  { %v764_v45 = vadd.f32 %v763_v44, %v692_v6  ;;  %v765_v47 = vpop.f32.mrb[3].mxu1 }
 0x431   :  { %v766_v48 = vadd.f32 %v765_v47, %v694_v46 }
 0x432   :  { %v870_v49 = vmul.f32 -1.442695, %v764_v45 }
 0x433   :  { %v871_v50 = vmul.f32 -1.442695, %v766_v48 }
 0x434   :  { %1042 = vpow2.f32 %v870_v49 }
 0x435   :  { %1044 = vpow2.f32 %v871_v50 }
 0x43e   :  { %v1043_v51 = vpop.eup %1042 }
 0x43f   :  { %v1045_v52 = vpop.eup %1044  ;;  %v774_v53 = vadd.f32 1.0, %v1043_v51 }
 0x440   :  { %v775_v54 = vadd.f32 1.0, %v1045_v52 }
 0x441   :  { %1046 = vrcp.f32 %v774_v53 }
 0x442   :  { %1048 = vrcp.f32 %v775_v54 }
 0x44b   :  { %v1047_v27 = vpop.eup %1046 }
 0x44c   :  { %v1049_v58 = vpop.eup %1048 }
 0x44d   :  { %v782_v59 = vcombine.low %v1047_v27, %v1049_v58 }
 0x44f   :  { %v789_v60 = vrot.slane %v782_v59, %v788_v57 }
 0x451   :  { %v790_v61 = vcombine.high %v789_v60, %v789_v60  ;;  %v797_v62 = vrot.slane %v789_v60, %v788_v57 }
 0x453   :  { %v804_v63 = vrot.slane %v790_v61, %v788_v57  ;;  %v808_v3 = vrot.slane %v797_v62, %v1207_v7  ;;  %v812_v10 = vrot.slane %v797_v62, %v1211_v12 }
 0x455   :  { %v816_v11 = vrot.slane %v804_v63, %v1207_v7  ;;  %v820_v13 = vrot.slane %v804_v63, %v1211_v12  ;;  %v825_v14 = vmul.f32 %v808_v3, %v1221_v18  ;;  %v826_v26 = vmul.f32 %v812_v10, %v1224_v19 }
 0x456   :  { %v827_v15 = vmul.f32 %v808_v3, %v1215_v16  ;;  %v828_v20 = vmul.f32 %v812_v10, %v1218_v17 }
 0x457   :  { %v829_v21 = vmul.f32 %v816_v11, %v1235_v33  ;;  %v830_v22 = vmul.f32 %v820_v13, %v1238_v34  ;;  %v831_v8 = vmul.f32 %v816_v11, %v1241_v35  ;;  %v832_v9 = vmul.f32 %v820_v13, %v1244_v36  ;;  %833 = vst [vmem:[#allocation7] sm:$0xff] %v825_v14 }
 0x458   :  { %834 = vst [vmem:[#allocation7 + $0x8] sm:$0xff] %v826_v26  ;;  %835 = vst [vmem:[#allocation7 + $0x10] sm:$0xff] %v827_v15 }
 0x459   :  { %836 = vst [vmem:[#allocation7 + $0x18] sm:$0xff] %v828_v20  ;;  %837 = vst [vmem:[#allocation7 + $0x20] sm:$0xff] %v829_v21 }
 0x45a   :  { %838 = vst [vmem:[#allocation7 + $0x28] sm:$0xff] %v830_v22  ;;  %839 = vst [vmem:[#allocation7 + $0x30] sm:$0xff] %v831_v8 }
 0x45b   :  { %840 = vst [vmem:[#allocation7 + $0x38] sm:$0xff] %v832_v9 }
 0x45c   :  { %1083 = shalt.err (!%p1080_p12)
}
 0x45d   :  { %s1084_s23 = scalar_lea.hbm %s1296_s4, 1024 }
 0x45e   :  { %p1085_p13 = scmp.ne.s32.totalorder %s1296_s4, %s1084_s23  ;;  %p1088_p0 = scmp.lt.u32.totalorder %s1084_s23, %s1296_s4 }
 0x460   :  { %p1090_p1 = pnand %p1088_p0, %p1085_p13 }
 0x462   :  { %1093 = shalt.err (!%p1090_p1)
}
 0x463   :  { %852 = dma.vmem_to_hbm [thread:$0]  %s847_s19, 1024, %s1296_s4, [#allocation6], %s1101_s25, %s1101_s25, %s1102_s26  }
 0x464   :  { %1098 = dma.done.wait [#allocation6], 1024  }
 0x465   :  { %1099 = vsyncadd [#allocation6], 4294966272 }
 0x466   :  { %856 = vsyncpa [#allocation5], 1 }
 0x467   :  { %857 = vsyncpa [#allocation6], 1 }
 0x468   :  { %858 = vsyncmov [#allocation3] }
 0x46b   :  { %s859_s6 = vpop.sfrf %858 }
 0x46c   :  { %p872_p2 = scmp.ne.s32.totalorder %s859_s6, 0 }
 0x46e   :  { %863 = shalt.err (%p872_p2)  }

</bundles_post_ra>
